<compile_context>
chip_gen: v7x
topology: tpu7x:2x2x1
jax: 0.10.0
libtpu: 0.0.40
codegen_flags: <defaults>
</compile_context>

<pallas_src>
import functools

import jax
import jax.numpy as jnp
from jax.experimental import pallas as pl
from jax.experimental.pallas import tpu as pltpu

BN_EPS = 1e-5


def _double_conv_kernel(count1, count2, nlpad, odd_l, cdt,
                        t1_ref, t2_ref, ml_ref, mr_ref, mv_ref,
                        g1_ref, bt1_ref, w1_ref, b1_ref,
                        g2_ref, bt2_ref, w2r_ref, b2r_ref,
                        out_ref):
    t1 = t1_ref[...]          # (Cin, NLpad)  = x[:, :, 0::2]  (raw, zero lane-pad)
    t2 = t2_ref[...]          # (Cin, NLpad)  = x[:, :, 1::2]  (raw, zero lane-pad)
    ml = ml_ref[...]          # (1, NLpad) 1.0 where valid and o != 0
    mr = mr_ref[...]          # (1, NLpad) 1.0 where valid and o != Lout-1
    mv = mv_ref[...]          # (1, NLpad) 1.0 where valid

    # ---- BN1 (training-mode batch stats over N*L), single-pass moments ----
    # t1 ∪ t2 covers x exactly; lane/odd-L pads are zero so plain sums are exact.
    inv1 = 1.0 / count1
    mean1 = (jnp.sum(t1, axis=1, keepdims=True)
             + jnp.sum(t2, axis=1, keepdims=True)) * inv1
    ex2_1 = (jnp.sum(t1 * t1, axis=1, keepdims=True)
             + jnp.sum(t2 * t2, axis=1, keepdims=True)) * inv1
    var1 = jnp.maximum(ex2_1 - mean1 * mean1, 0.0)            # biased variance
    scale1 = g1_ref[...] * jax.lax.rsqrt(var1 + BN_EPS)
    shift1 = bt1_ref[...] - mean1 * scale1

    a1 = jnp.maximum(t1 * scale1 + shift1, 0.0)               # tap t=1 activation
    a2 = jnp.maximum(t2 * scale1 + shift1, 0.0)               # tap t=2 activation
    # tap t=0 activation = tap2 activation shifted right by one output position;
    # o == 0 corresponds to the conv zero-padding -> mask post-activation to 0.
    a0 = pltpu.roll(a2, 1, axis=1) * ml
    # For odd L the last tap2 column is conv padding too -> mask post-activation.
    a2c = a2 * mr if odd_l else a2

    # ---- Conv1d(Cin->Cout, k=3, s=2, p=1): ONE fused MXU matmul ----
    acat = jnp.concatenate([a0, a1, a2c], axis=0).astype(cdt)  # (3*Cin, NLpad)
    h = (jnp.dot(w1_ref[...], acat, preferred_element_type=jnp.float32)
         + b1_ref[...])                                        # (Cout, NLpad)

    # ---- BN2 (batch stats over valid lanes) + ReLU, folded scale/shift ----
    inv2 = 1.0 / count2
    hm = h * mv                                                # exclude lane pads
    mean2 = jnp.sum(hm, axis=1, keepdims=True) * inv2
    var2 = jnp.maximum(jnp.sum(hm * h, axis=1, keepdims=True) * inv2
                       - mean2 * mean2, 0.0)
    scale2 = g2_ref[...] * jax.lax.rsqrt(var2 + BN_EPS)
    shift2 = bt2_ref[...] - mean2 * scale2
    g = jnp.maximum(h * scale2 + shift2, 0.0)

    # ---- Conv1d(Cout->Cout,k=3,s=1,p=1) + residual Conv1d(Cin->Cout,k=1,s=2):
    #      ONE fused MXU matmul (residual weight appended to conv2 weight,
    #      residual bias folded into b2 in the wrapper) ----
    gl = pltpu.roll(g, 1, axis=1) * ml                         # g[o-1], 0 at o==0
    gr = pltpu.roll(g, nlpad - 1, axis=1) * mr                 # g[o+1], 0 at o==Lout-1
    rhs = jnp.concatenate([gl, g, gr, t1], axis=0).astype(cdt)  # (3*Cout+Cin, NLpad)
    out_ref[...] = (jnp.dot(w2r_ref[...], rhs,
                            preferred_element_type=jnp.float32)
                    + b2r_ref[...])


def double_conv_forward(x, params, *, compute_dtype=jnp.float32):
    """x: (N, Cin, L) float32 (PyTorch NCL). Returns (N, Cout, Lout) float32.

    compute_dtype: dtype of the matmul *operands* (accumulation stays f32).
    Use jnp.bfloat16 on v6e/v7x for MXU throughput; f32 is exact.
    """
    N, Cin, L = x.shape
    Cout = params["w1"].shape[0]
    Lout = (L - 1) // 2 + 1          # Conv1d k=3, s=2, p=1 output length
    NL = N * Lout
    NLpad = ((NL + 127) // 128) * 128   # lane-dense matmul RHS / output store
    odd_l = (L % 2 == 1)

    # ---- layout plumbing: even/odd deinterleave + channels-major flatten ----
    x_even = x[:, :, 0::2]                                   # (N, Cin, Lout)
    x_odd = x[:, :, 1::2]                                    # (N, Cin, Lout or Lout-1)
    if x_odd.shape[-1] < Lout:                               # odd L: pad one column
        x_odd = jnp.pad(x_odd, ((0, 0), (0, 0), (0, Lout - x_odd.shape[-1])))

    def to_cm(a):  # (N, C, Lout) -> (C, NLpad), zero lane padding
        cm = jnp.transpose(a, (1, 0, 2)).reshape(a.shape[1], NL)
        return jnp.pad(cm, ((0, 0), (0, NLpad - NL)))

    t1 = to_cm(x_even)                                       # (Cin, NLpad)
    t2 = to_cm(x_odd)                                        # (Cin, NLpad)

    # Tiny precomputed lane masks (avoid in-kernel iota + modulo).
    col = jnp.arange(NLpad, dtype=jnp.int32)
    valid = col < NL
    o = col % Lout
    m_left = (valid & (o != 0)).astype(jnp.float32)[None, :]
    m_right = (valid & (o != Lout - 1)).astype(jnp.float32)[None, :]
    m_valid = valid.astype(jnp.float32)[None, :]

    # Concatenated conv weights -> one matmul per conv (conv1: K = 3*Cin;
    # conv2 + residual: K = 3*Cout + Cin, residual bias folded into b2).
    w1cat = jnp.concatenate([params["w1"][:, :, 0], params["w1"][:, :, 1],
                             params["w1"][:, :, 2]], axis=1).astype(compute_dtype)
    w2rcat = jnp.concatenate([params["w2"][:, :, 0], params["w2"][:, :, 1],
                              params["w2"][:, :, 2],
                              params["wr"][:, :, 0]], axis=1).astype(compute_dtype)
    b2r = (params["b2"] + params["br"]).reshape(Cout, 1)

    # VMEM footprint estimate (inputs + output + main intermediates), and cap.
    slab_bytes = 4 * NLpad * (2 * Cin + 3 + Cout          # t1, t2, masks, out
                              + 4 * Cin + 3 * Cin         # a0/a1/a2/a2c, acat
                              + 6 * Cout                  # h, hm, g, gl, gr, slack
                              + 3 * Cout + Cin)           # fused conv2+res RHS
    if slab_bytes > 48 * 2**20:
        # TODO(synk): lane-tiled multi-phase grid for big slabs (v7x 64 MiB VMEM).
        raise ValueError("Double_Conv slab too large for single-shot kernel; "
                         "needs lane-axis tiling")
    vmem_limit = int(min(64 * 2**20, max(8 * 2**20, 2 * slab_bytes)))

    vmem = pl.BlockSpec(memory_space=pltpu.MemorySpace.VMEM)
    kernel = functools.partial(_double_conv_kernel,
                               float(N * L), float(NL), NLpad, odd_l,
                               compute_dtype)

    out_flat = pl.pallas_call(
        kernel,
        out_shape=jax.ShapeDtypeStruct((Cout, NLpad), jnp.float32),
        in_specs=[vmem] * 13,
        out_specs=vmem,
        compiler_params=pltpu.CompilerParams(vmem_limit_bytes=vmem_limit),
    )(
        t1, t2, m_left, m_right, m_valid,
        params["g1"].reshape(Cin, 1), params["bt1"].reshape(Cin, 1),
        w1cat, params["b1"].reshape(Cout, 1),
        params["g2"].reshape(Cout, 1), params["bt2"].reshape(Cout, 1),
        w2rcat, b2r,
    )

    # Back to PyTorch NCL layout (trim the lane padding).
    return out_flat[:, :NL].reshape(Cout, N, Lout).transpose(1, 0, 2)


def reference_forward(x, p):
    """Pure-JAX reference (independent of the kernel's decomposition)."""
    dn = ("NCH", "OIH", "NCH")

    def bn_train(a, g, b):
        m = jnp.mean(a, axis=(0, 2), keepdims=True)
        v = jnp.mean((a - m) ** 2, axis=(0, 2), keepdims=True)
        return (a - m) * jax.lax.rsqrt(v + BN_EPS) * g[None, :, None] + b[None, :, None]

    a = jax.nn.relu(bn_train(x, p["g1"], p["bt1"]))
    h = jax.lax.conv_general_dilated(a, p["w1"], (2,), ((1, 1),),
                                     dimension_numbers=dn) + p["b1"][None, :, None]
    a2 = jax.nn.relu(bn_train(h, p["g2"], p["bt2"]))
    y = jax.lax.conv_general_dilated(a2, p["w2"], (1,), ((1, 1),),
                                     dimension_numbers=dn) + p["b2"][None, :, None]
    s = jax.lax.conv_general_dilated(x, p["wr"], (2,), ((0, 0),),
                                     dimension_numbers=dn) + p["br"][None, :, None]
    return y + s


def _make_params(key, cin, cout):
    ks = jax.random.split(key, 6)
    return dict(
        # BatchNorm affine params at PyTorch defaults (gamma=1, beta=0).
        g1=jnp.ones((cin,), jnp.float32), bt1=jnp.zeros((cin,), jnp.float32),
        g2=jnp.ones((cout,), jnp.float32), bt2=jnp.zeros((cout,), jnp.float32),
        w1=0.1 * jax.random.normal(ks[0], (cout, cin, 3), jnp.float32),
        b1=0.1 * jax.random.normal(ks[1], (cout,), jnp.float32),
        w2=0.1 * jax.random.normal(ks[2], (cout, cout, 3), jnp.float32),
        b2=0.1 * jax.random.normal(ks[3], (cout,), jnp.float32),
        wr=0.1 * jax.random.normal(ks[4], (cout, cin, 1), jnp.float32),
        br=0.1 * jax.random.normal(ks[5], (cout,), jnp.float32),
    )


if __name__ == "__main__":
    key = jax.random.PRNGKey(0)
    N, Cin, Cout, L = 2, 4, 8, 16
    kx, kp, kx2 = jax.random.split(key, 3)

    x = jax.random.normal(kx, (N, Cin, L), jnp.float32)
    params = _make_params(kp, Cin, Cout)

    ref = jax.block_until_ready(reference_forward(x, params))
    Lout = (L - 1) // 2 + 1

    # Exact (f32-operand) path: tight tolerance.
    out = jax.block_until_ready(double_conv_forward(x, params))
    assert out.shape == (N, Cout, Lout), out.shape
    assert jnp.allclose(out, ref, rtol=1e-3, atol=1e-3), float(
        jnp.max(jnp.abs(out - ref)))

    # bf16-operand path (v6e/v7x MXU fast path): looser tolerance.
    out_bf16 = jax.block_until_ready(
        double_conv_forward(x, params, compute_dtype=jnp.bfloat16))
    assert out_bf16.shape == (N, Cout, Lout), out_bf16.shape
    assert jnp.allclose(out_bf16, ref, rtol=0.0, atol=1e-1), float(
        jnp.max(jnp.abs(out_bf16 - ref)))

    # Odd-length input exercises the tap-2 right-edge conv-padding mask.
    L_odd = 15
    x_odd_len = jax.random.normal(kx2, (N, Cin, L_odd), jnp.float32)
    ref_odd = jax.block_until_ready(reference_forward(x_odd_len, params))
    out_odd = jax.block_until_ready(double_conv_forward(x_odd_len, params))
    assert out_odd.shape == (N, Cout, (L_odd - 1) // 2 + 1), out_odd.shape
    assert jnp.allclose(out_odd, ref_odd, rtol=1e-3, atol=1e-3), float(
        jnp.max(jnp.abs(out_odd - ref_odd)))

    print("KERNEL_OK")
</pallas_src>

<mosaic_0001>
module attributes {stable_mosaic.version = 11 : i64} {
  func.func @_double_conv_kernel(%arg0: memref<4x128xf32, #tpu.memory_space<vmem>>, %arg1: memref<4x128xf32, #tpu.memory_space<vmem>>, %arg2: memref<1x128xf32, #tpu.memory_space<vmem>>, %arg3: memref<1x128xf32, #tpu.memory_space<vmem>>, %arg4: memref<1x128xf32, #tpu.memory_space<vmem>>, %arg5: memref<4x1xf32, #tpu.memory_space<vmem>>, %arg6: memref<4x1xf32, #tpu.memory_space<vmem>>, %arg7: memref<8x12xf32, #tpu.memory_space<vmem>>, %arg8: memref<8x1xf32, #tpu.memory_space<vmem>>, %arg9: memref<8x1xf32, #tpu.memory_space<vmem>>, %arg10: memref<8x1xf32, #tpu.memory_space<vmem>>, %arg11: memref<8x28xf32, #tpu.memory_space<vmem>>, %arg12: memref<8x1xf32, #tpu.memory_space<vmem>>, %arg13: memref<8x128xf32, #tpu.memory_space<vmem>>) attributes {dimension_semantics = [], scalar_prefetch = 0 : i64, scratch_operands = 0 : i64, tpu.core_type = #tpu.core_type<tc>} {
    %c0 = arith.constant 0 : index
    %c0_0 = arith.constant 0 : index
    %0 = vector.load %arg0[%c0, %c0_0] : memref<4x128xf32, #tpu.memory_space<vmem>>, vector<4x128xf32>
    %c0_1 = arith.constant 0 : index
    %c0_2 = arith.constant 0 : index
    %1 = vector.load %arg1[%c0_1, %c0_2] : memref<4x128xf32, #tpu.memory_space<vmem>>, vector<4x128xf32>
    %c0_3 = arith.constant 0 : index
    %c0_4 = arith.constant 0 : index
    %2 = vector.load %arg2[%c0_3, %c0_4] : memref<1x128xf32, #tpu.memory_space<vmem>>, vector<1x128xf32>
    %c0_5 = arith.constant 0 : index
    %c0_6 = arith.constant 0 : index
    %3 = vector.load %arg3[%c0_5, %c0_6] : memref<1x128xf32, #tpu.memory_space<vmem>>, vector<1x128xf32>
    %c0_7 = arith.constant 0 : index
    %c0_8 = arith.constant 0 : index
    %4 = vector.load %arg4[%c0_7, %c0_8] : memref<1x128xf32, #tpu.memory_space<vmem>>, vector<1x128xf32>
    %cst = arith.constant dense<0.000000e+00> : vector<4xf32>
    %5 = vector.multi_reduction <add>, %0, %cst [1] : vector<4x128xf32> to vector<4xf32>
    %6 = vector.shape_cast %5 : vector<4xf32> to vector<4x1xf32>
    %cst_9 = arith.constant dense<0.000000e+00> : vector<4xf32>
    %7 = vector.multi_reduction <add>, %1, %cst_9 [1] : vector<4x128xf32> to vector<4xf32>
    %8 = vector.shape_cast %7 : vector<4xf32> to vector<4x1xf32>
    %9 = arith.addf %6, %8 : vector<4x1xf32>
    %cst_10 = arith.constant 3.125000e-02 : f32
    %10 = vector.broadcast %cst_10 : f32 to vector<4x1xf32>
    %11 = arith.mulf %9, %10 : vector<4x1xf32>
    %12 = arith.mulf %0, %0 : vector<4x128xf32>
    %cst_11 = arith.constant dense<0.000000e+00> : vector<4xf32>
    %13 = vector.multi_reduction <add>, %12, %cst_11 [1] : vector<4x128xf32> to vector<4xf32>
    %14 = vector.shape_cast %13 : vector<4xf32> to vector<4x1xf32>
    %15 = arith.mulf %1, %1 : vector<4x128xf32>
    %cst_12 = arith.constant dense<0.000000e+00> : vector<4xf32>
    %16 = vector.multi_reduction <add>, %15, %cst_12 [1] : vector<4x128xf32> to vector<4xf32>
    %17 = vector.shape_cast %16 : vector<4xf32> to vector<4x1xf32>
    %18 = arith.addf %14, %17 : vector<4x1xf32>
    %cst_13 = arith.constant 3.125000e-02 : f32
    %19 = vector.broadcast %cst_13 : f32 to vector<4x1xf32>
    %20 = arith.mulf %18, %19 : vector<4x1xf32>
    %21 = arith.mulf %11, %11 : vector<4x1xf32>
    %22 = arith.subf %20, %21 : vector<4x1xf32>
    %cst_14 = arith.constant 0.000000e+00 : f32
    %23 = vector.broadcast %cst_14 : f32 to vector<4x1xf32>
    %24 = arith.maximumf %22, %23 : vector<4x1xf32>
    %c0_15 = arith.constant 0 : index
    %c0_16 = arith.constant 0 : index
    %25 = vector.load %arg5[%c0_15, %c0_16] : memref<4x1xf32, #tpu.memory_space<vmem>>, vector<4x1xf32>
    %cst_17 = arith.constant 9.99999974E-6 : f32
    %26 = vector.broadcast %cst_17 : f32 to vector<4x1xf32>
    %27 = arith.addf %24, %26 : vector<4x1xf32>
    %28 = math.rsqrt %27 : vector<4x1xf32>
    %29 = arith.mulf %25, %28 : vector<4x1xf32>
    %c0_18 = arith.constant 0 : index
    %c0_19 = arith.constant 0 : index
    %30 = vector.load %arg6[%c0_18, %c0_19] : memref<4x1xf32, #tpu.memory_space<vmem>>, vector<4x1xf32>
    %31 = arith.mulf %11, %29 : vector<4x1xf32>
    %32 = arith.subf %30, %31 : vector<4x1xf32>
    %33 = vector.broadcast %29 : vector<4x1xf32> to vector<4x128xf32>
    %34 = arith.mulf %0, %33 : vector<4x128xf32>
    %35 = vector.broadcast %32 : vector<4x1xf32> to vector<4x128xf32>
    %36 = arith.addf %34, %35 : vector<4x128xf32>
    %cst_20 = arith.constant 0.000000e+00 : f32
    %37 = vector.broadcast %cst_20 : f32 to vector<4x128xf32>
    %38 = arith.maximumf %36, %37 : vector<4x128xf32>
    %39 = vector.broadcast %29 : vector<4x1xf32> to vector<4x128xf32>
    %40 = arith.mulf %1, %39 : vector<4x128xf32>
    %41 = vector.broadcast %32 : vector<4x1xf32> to vector<4x128xf32>
    %42 = arith.addf %40, %41 : vector<4x128xf32>
    %cst_21 = arith.constant 0.000000e+00 : f32
    %43 = vector.broadcast %cst_21 : f32 to vector<4x128xf32>
    %44 = arith.maximumf %42, %43 : vector<4x128xf32>
    %c1_i32 = arith.constant 1 : i32
    %45 = tpu.dynamic_rotate %44 by %c1_i32 dim 1 : vector<4x128xf32>, i32 -> vector<4x128xf32>
    %46 = vector.broadcast %2 : vector<1x128xf32> to vector<4x128xf32>
    %47 = arith.mulf %45, %46 : vector<4x128xf32>
    %48 = tpu.concatenate %47, %38, %44 in 0 : vector<4x128xf32>, vector<4x128xf32>, vector<4x128xf32> -> vector<12x128xf32>
    %c0_22 = arith.constant 0 : index
    %c0_23 = arith.constant 0 : index
    %49 = vector.load %arg7[%c0_22, %c0_23] : memref<8x12xf32, #tpu.memory_space<vmem>>, vector<8x12xf32>
    %cst_24 = arith.constant dense<0.000000e+00> : vector<8x128xf32>
    %50 = tpu.matmul %49, %48, %cst_24 {dimension_numbers = #tpu.dot_dimension_numbers<[1], [0], [0], [1], [0, 0, 1, 1], [], []>} : vector<8x12xf32>, vector<12x128xf32>, vector<8x128xf32> -> vector<8x128xf32>
    %c0_25 = arith.constant 0 : index
    %c0_26 = arith.constant 0 : index
    %51 = vector.load %arg8[%c0_25, %c0_26] : memref<8x1xf32, #tpu.memory_space<vmem>>, vector<8x1xf32>
    %52 = vector.broadcast %51 : vector<8x1xf32> to vector<8x128xf32>
    %53 = arith.addf %50, %52 : vector<8x128xf32>
    %54 = vector.broadcast %4 : vector<1x128xf32> to vector<8x128xf32>
    %55 = arith.mulf %53, %54 : vector<8x128xf32>
    %cst_27 = arith.constant dense<0.000000e+00> : vector<8xf32>
    %56 = vector.multi_reduction <add>, %55, %cst_27 [1] : vector<8x128xf32> to vector<8xf32>
    %57 = vector.shape_cast %56 : vector<8xf32> to vector<8x1xf32>
    %cst_28 = arith.constant 6.250000e-02 : f32
    %58 = vector.broadcast %cst_28 : f32 to vector<8x1xf32>
    %59 = arith.mulf %57, %58 : vector<8x1xf32>
    %60 = arith.mulf %55, %53 : vector<8x128xf32>
    %cst_29 = arith.constant dense<0.000000e+00> : vector<8xf32>
    %61 = vector.multi_reduction <add>, %60, %cst_29 [1] : vector<8x128xf32> to vector<8xf32>
    %62 = vector.shape_cast %61 : vector<8xf32> to vector<8x1xf32>
    %cst_30 = arith.constant 6.250000e-02 : f32
    %63 = vector.broadcast %cst_30 : f32 to vector<8x1xf32>
    %64 = arith.mulf %62, %63 : vector<8x1xf32>
    %65 = arith.mulf %59, %59 : vector<8x1xf32>
    %66 = arith.subf %64, %65 : vector<8x1xf32>
    %cst_31 = arith.constant 0.000000e+00 : f32
    %67 = vector.broadcast %cst_31 : f32 to vector<8x1xf32>
    %68 = arith.maximumf %66, %67 : vector<8x1xf32>
    %c0_32 = arith.constant 0 : index
    %c0_33 = arith.constant 0 : index
    %69 = vector.load %arg9[%c0_32, %c0_33] : memref<8x1xf32, #tpu.memory_space<vmem>>, vector<8x1xf32>
    %cst_34 = arith.constant 9.99999974E-6 : f32
    %70 = vector.broadcast %cst_34 : f32 to vector<8x1xf32>
    %71 = arith.addf %68, %70 : vector<8x1xf32>
    %72 = math.rsqrt %71 : vector<8x1xf32>
    %73 = arith.mulf %69, %72 : vector<8x1xf32>
    %c0_35 = arith.constant 0 : index
    %c0_36 = arith.constant 0 : index
    %74 = vector.load %arg10[%c0_35, %c0_36] : memref<8x1xf32, #tpu.memory_space<vmem>>, vector<8x1xf32>
    %75 = arith.mulf %59, %73 : vector<8x1xf32>
    %76 = arith.subf %74, %75 : vector<8x1xf32>
    %77 = vector.broadcast %73 : vector<8x1xf32> to vector<8x128xf32>
    %78 = arith.mulf %53, %77 : vector<8x128xf32>
    %79 = vector.broadcast %76 : vector<8x1xf32> to vector<8x128xf32>
    %80 = arith.addf %78, %79 : vector<8x128xf32>
    %cst_37 = arith.constant 0.000000e+00 : f32
    %81 = vector.broadcast %cst_37 : f32 to vector<8x128xf32>
    %82 = arith.maximumf %80, %81 : vector<8x128xf32>
    %c1_i32_38 = arith.constant 1 : i32
    %83 = tpu.dynamic_rotate %82 by %c1_i32_38 dim 1 : vector<8x128xf32>, i32 -> vector<8x128xf32>
    %84 = vector.broadcast %2 : vector<1x128xf32> to vector<8x128xf32>
    %85 = arith.mulf %83, %84 : vector<8x128xf32>
    %c127_i32 = arith.constant 127 : i32
    %86 = tpu.dynamic_rotate %82 by %c127_i32 dim 1 : vector<8x128xf32>, i32 -> vector<8x128xf32>
    %87 = vector.broadcast %3 : vector<1x128xf32> to vector<8x128xf32>
    %88 = arith.mulf %86, %87 : vector<8x128xf32>
    %89 = tpu.concatenate %85, %82, %88, %0 in 0 : vector<8x128xf32>, vector<8x128xf32>, vector<8x128xf32>, vector<4x128xf32> -> vector<28x128xf32>
    %c0_39 = arith.constant 0 : index
    %c0_40 = arith.constant 0 : index
    %90 = vector.load %arg11[%c0_39, %c0_40] : memref<8x28xf32, #tpu.memory_space<vmem>>, vector<8x28xf32>
    %cst_41 = arith.constant dense<0.000000e+00> : vector<8x128xf32>
    %91 = tpu.matmul %90, %89, %cst_41 {dimension_numbers = #tpu.dot_dimension_numbers<[1], [0], [0], [1], [0, 0, 1, 1], [], []>} : vector<8x28xf32>, vector<28x128xf32>, vector<8x128xf32> -> vector<8x128xf32>
    %c0_42 = arith.constant 0 : index
    %c0_43 = arith.constant 0 : index
    %92 = vector.load %arg12[%c0_42, %c0_43] : memref<8x1xf32, #tpu.memory_space<vmem>>, vector<8x1xf32>
    %93 = vector.broadcast %92 : vector<8x1xf32> to vector<8x128xf32>
    %94 = arith.addf %91, %93 : vector<8x128xf32>
    %c0_44 = arith.constant 0 : index
    %c0_45 = arith.constant 0 : index
    %95 = vector.load %arg13[%c0_44, %c0_45] : memref<8x128xf32, #tpu.memory_space<vmem>>, vector<8x128xf32>
    tpu.vector_store %arg13[%c0_44, %c0_45], %94 {strides = array<i32>} : memref<8x128xf32, #tpu.memory_space<vmem>>, vector<8x128xf32>,
    return
  }
}

</mosaic_0001>

<bundles_post_ra>
// kernel: tpu_custom_call.1
= control target key start
LH: loop header
LB: loop body
LE: loop exit
PB: predicated region body
PF: predicated region fallthrough
CT: control target
= control target key end

     0   :  { %vm50_vm0 = vcmask 1043456   ;;  %s577_s0 = inlined_call_operand.vmem [shape: f32[4,128], index: 0, kind: input, shape index: {}]   ;;  %s578_s1 = inlined_call_operand.vmem [shape: f32[4,128], index: 1, kind: input, shape index: {}]   ;;  %s579_s2 = inlined_call_operand.vmem [shape: f32[1,128], index: 2, kind: input, shape index: {}]   ;;  %s580_s3 = inlined_call_operand.vmem [shape: f32[1,128], index: 3, kind: input, shape index: {}]   ;;  %s581_s4 = inlined_call_operand.vmem [shape: f32[1,128], index: 4, kind: input, shape index: {}]   ;;  %s582_s5 = inlined_call_operand.vmem [shape: f32[4,1], index: 5, kind: input, shape index: {}]   ;;  %s583_s6 = inlined_call_operand.vmem [shape: f32[4,1], index: 6, kind: input, shape index: {}]   ;;  %s584_s7 = inlined_call_operand.vmem [shape: f32[8,12], index: 7, kind: input, shape index: {}]   ;;  %s585_s8 = inlined_call_operand.vmem [shape: f32[8,1], index: 8, kind: input, shape index: {}]   ;;  %s586_s9 = inlined_call_operand.vmem [shape: f32[8,1], index: 9, kind: input, shape index: {}]   ;;  %s587_s10 = inlined_call_operand.vmem [shape: f32[8,1], index: 10, kind: input, shape index: {}]   ;;  %s588_s11 = inlined_call_operand.vmem [shape: f32[8,28], index: 11, kind: input, shape index: {}]   ;;  %s589_s12 = inlined_call_operand.vmem [shape: f32[8,1], index: 12, kind: input, shape index: {}]   ;;  %s590_s13 = inlined_call_operand.hbm [shape: f32[8,128], index: 13, kind: output, shape index: {}]  }
   0x1   :  { %v503_v0 = vld [vmem:[%s577_s0] sm:$0xf] }
   0x2   :  { %v46_v1 = vld [vmem:[%s578_s1] sm:$0xf]  ;;  %v51_v2 = vsel %vm50_vm0, %v503_v0, 0.0  ;;  %v59_v3 = vmul.f32 %v503_v0, %v503_v0 }
   0x3   :  { %v63_v4 = vmul.f32 %v46_v1, %v46_v1 }
   0x4   :  { %18 = vsyncpa [#allocation3], 0  ;;  %52 = vadd.xlane.f32.xlu0 %v51_v2  ;;  %v60_v5 = vsel %vm50_vm0, %v59_v3, 0.0  ;;  %v54_v6 = vsel %vm50_vm0, %v46_v1, 0.0  ;;  %v422_v8 = vmov 0   ;;  %v423_v27 = vmov 0.0|0.0  }
   0x5   :  { %61 = vadd.xlane.f32.xlu1 %v60_v5  ;;  %v64_v7 = vsel %vm50_vm0, %v63_v4, 0.0  ;;  %392 = vset.pattern.permute.xlu0 %v422_v8  ;;  %v72_v21 = vld [vmem:[%s582_s5] sm:$0xf]  ;;  %vm424_vm1 = vmmov 0   ;;  %v425_v29 = vmov 0.0   ;;  %s426_s5 = smov 1  }
   0x6   :  { %393 = vset.pattern.permute.xlu1 %v422_v8  ;;  %v76_v24 = vld [vmem:[%s583_s6] sm:$0xf]  ;;  %373 = vmatprep.subr.bf16.mxu0 %v423_v27  ;;  %vm427_vm2 = vmmov 1   ;;  %vm115_vm4 = vcmask 97280   ;;  %s428_s21 = smov 127   ;;  %vm248_vm5 = vcmask 228352  }
   0x7   :  { %377 = vmatprep.subr.bf16.mxu1 %v423_v27  ;;  %359 = vmatprep.mubr.msk.f32.mxu0 %vm424_vm1, %v425_v29  ;;  %v109_v34 = vld [vmem:[%s585_s8] sm:$0xff]  ;;  %vm533_vm3 = vmpackc.low %vm50_vm0, %vm427_vm2  ;;  %s429_s25 = smov [#allocation2]  }
   0x8   :  { %55 = vadd.xlane.f32.xlu0 %v54_v6  ;;  %370 = vmatprep.mubr.msk.f32.mxu1 %vm424_vm1, %v425_v29  ;;  %v340_v38 = vld [vmem:[%s579_s2] ss:$0 sm:$0xff]  ;;  %s332_s26 = sshll.u32 %s429_s25, 4  ;;  %s333_s26 = int_to_ptr.vmem [resolvable:$true] %s332_s26 }
   0x9   :  { %65 = vadd.xlane.f32.xlu1 %v64_v7  ;;  %v108_v45 = vld [vmem:[%s584_s7] sm:$0xff]  ;;  %p403_p1 = scmp.lt.s32.totalorder %s333_s26, %s333_s26 }
   0xa   :  { %v343_v48 = vld [vmem:[%s581_s4] ss:$0 sm:$0xff] }
   0xb   :  { %v209_v61 = vld [vmem:[%s586_s9] sm:$0xff] }
  0x91   :  { %v53_v9 = vpop.xlane.xlu0 %52 }
  0x92   :  { %v62_v10 = vpop.xlane.xlu1 %61 }
  0x95   :  { %v56_v11 = vpop.xlane.xlu0 %55 }
  0x96   :  { %v57_v12 = vadd.f32 %v56_v11, %v53_v9  ;;  %v66_v13 = vpop.xlane.xlu1 %65  ;;  %v242_v9 = vld [vmem:[%s589_s12] sm:$0xff] }
  0x97   :  { %v67_v15 = vadd.f32 %v66_v13, %v62_v10 }
  0x98   :  { %v58_v14 = vmul.f32 0.03125, %v57_v12  ;;  %v344_v12 = vld [vmem:[%s580_s3] ss:$0 sm:$0xff]  ;;  %s398_s3 = scalar_lea.vmem %s333_s26, 128 }
  0x99   :  { %v68_v17 = vmul.f32 0.03125, %v67_v15  ;;  %p399_p0 = scmp.ne.s32.totalorder %s333_s26, %s398_s3  ;;  %p404_p2 = scmp.lt.s32.totalorder %s398_s3, %s398_s3 }
  0x9a   :  { %v69_v16 = vmul.f32 %v58_v14, %v58_v14 }
  0x9b   :  { %p405_p3 = por %p404_p2, %p403_p1 }
  0x9c   :  { %v70_v18 = vsub.f32 %v68_v17, %v69_v16  ;;  %v241_v17 = vld [vmem:[%s588_s11] sm:$0xff] }
  0x9d   :  { %p406_p4 = pnand %p405_p3, %p399_p0 }
  0x9e   :  { %v71_v19 = vmax.f32 %v70_v18, 0.0 }
  0xa0   :  { %v73_v20 = vadd.f32 1e-05, %v71_v19 }
  0xa2   :  { %394 = vrsqrt.f32 %v73_v20 }
  0xac   :  { %v395_v22 = vpop.eup %394 }
  0xad   :  { %v75_v23 = vmul.f32 %v395_v22, %v72_v21 }
  0xaf   :  { %81 = vperm.xlu0 %392, %v75_v23   ;;  %v77_v25 = vmul.f32 %v75_v23, %v58_v14 }
  0xb1   :  { %v78_v26 = vsub.f32 %v76_v24, %v77_v25 }
  0xb3   :  { %87 = vperm.xlu1 %393, %v78_v26  }
 0x12e   :  { %v82_v28 = vpop.permute.xlu0 %81 }
 0x12f   :  { %v92_v30 = vmul.f32 %v82_v28, %v46_v1  ;;  %v84_v35 = vmul.f32 %v82_v28, %v503_v0  ;;  %v213_v1 = vld [vmem:[%s587_s10] sm:$0xff] }
 0x132   :  { %v88_v31 = vpop.permute.xlu1 %87 }
 0x133   :  { %v93_v32 = vadd.f32 %v92_v30, %v88_v31  ;;  %v90_v36 = vadd.f32 %v88_v31, %v84_v35 }
 0x135   :  { %v94_v33 = vmax.f32 %v93_v32, 0.0  ;;  %v91_v37 = vmax.f32 %v90_v36, 0.0 }
 0x137   :  { %95 = vrot.lane.b32.xlu1 %v94_v33, %s426_s5  ;;  %v105_v40 = vrot.slane %v91_v37, 4 }
 0x13b   :  { %112 = vperm.xlu1 %393, %v109_v34  }
 0x1a9   :  { %v96_v39 = vpop.permute.xlu1 %95 }
 0x1aa   :  { %v103_v41 = vmul.f32 %v340_v38, %v96_v39 }
 0x1ac   :  { %v107_v42 = vsel %vm50_vm0, %v103_v41, %v105_v40 }
 0x1ad   :  { %v374_v44 = vpack.c.bf16 %v94_v33, %v107_v42 }
 0x1af   :  { %376 = vmatpush3.bf16.msk.msra.mxu0 %vm533_vm3, %v374_v44 }
 0x1b2   :  { %360 = vmatmul.mubr.msk.f32.vlgmr.msra.gmra.mrb[0].mxu0 %vm115_vm4, %v108_v45 }
 0x1ba   :  { %v113_v46 = vpop.permute.xlu1 %112 }
 0x285   :  { %v188_v47 = vpop.f32.mrb[0].mxu0 }
 0x286   :  { %v189_v49 = vadd.f32 %v188_v47, %v113_v46  ;;  %v361_v50 = vpop.f32.mrb[1].mxu0 }
 0x288   :  { %v198_v51 = vmul.f32 %v343_v48, %v189_v49 }
 0x28a   :  { %199 = vadd.xlane.f32.xlu1 %v198_v51  ;;  %v202_v52 = vmul.f32 %v198_v51, %v189_v49 }
 0x28c   :  { %203 = vadd.xlane.f32.xlu0 %v202_v52 }
 0x317   :  { %v200_v53 = vpop.xlane.xlu1 %199 }
 0x318   :  { %v201_v54 = vmul.f32 0.0625, %v200_v53 }
 0x319   :  { %v204_v55 = vpop.xlane.xlu0 %203 }
 0x31a   :  { %v206_v56 = vmul.f32 %v201_v54, %v201_v54  ;;  %v205_v57 = vmul.f32 0.0625, %v204_v55 }
 0x31c   :  { %v207_v58 = vsub.f32 %v205_v57, %v206_v56 }
 0x31e   :  { %v208_v59 = vmax.f32 %v207_v58, 0.0 }
 0x320   :  { %v210_v60 = vadd.f32 1e-05, %v208_v59 }
 0x322   :  { %396 = vrsqrt.f32 %v210_v60 }
 0x32c   :  { %v397_v62 = vpop.eup %396 }
 0x32d   :  { %v212_v63 = vmul.f32 %v397_v62, %v209_v61 }
 0x32f   :  { %218 = vperm.xlu1 %393, %v212_v63   ;;  %v214_v2 = vmul.f32 %v212_v63, %v201_v54 }
 0x331   :  { %v215_v3 = vsub.f32 %v213_v1, %v214_v2 }
 0x333   :  { %224 = vperm.xlu0 %392, %v215_v3  }
 0x3ae   :  { %v219_v4 = vpop.permute.xlu1 %218 }
 0x3af   :  { %v221_v5 = vmul.f32 %v219_v4, %v189_v49 }
 0x3b2   :  { %v225_v6 = vpop.permute.xlu0 %224 }
 0x3b3   :  { %v227_v7 = vadd.f32 %v225_v6, %v221_v5 }
 0x3b5   :  { %v228_v8 = vmax.f32 %v227_v7, 0.0 }
 0x3b7   :  { %229 = vrot.lane.b32.xlu1 %v228_v8, %s426_s5 }
 0x3bb   :  { %232 = vrot.lane.b32.xlu1 %v228_v8, %s428_s21 }
 0x3bf   :  { %245 = vperm.xlu1 %393, %v242_v9  }
 0x429   :  { %v230_v10 = vpop.permute.xlu1 %229 }
 0x42a   :  { %v231_v11 = vmul.f32 %v340_v38, %v230_v10 }
 0x42c   :  { %v378_v13 = vpack.c.bf16 %v228_v8, %v231_v11 }
 0x42d   :  { %v233_v14 = vpop.permute.xlu1 %232 }
 0x42e   :  { %v240_v15 = vmul.f32 %v344_v12, %v233_v14  ;;  %379 = vmatpush3.bf16.msra.mxu1 %v378_v13 }
 0x42f   :  { %380 = vmatprep.subr.bf16.mxu1 %v423_v27 }
 0x430   :  { %v381_v16 = vpack.c.bf16 %v503_v0, %v240_v15 }
 0x432   :  { %383 = vmatpush3.bf16.msk.msra.mxu1 %vm533_vm3, %v381_v16 }
 0x435   :  { %371 = vmatmul.mubr.msk.f32.vlgmr.msra.gmra.mrb[0].mxu1 %vm248_vm5, %v241_v17 }
 0x43e   :  { %v246_v18 = vpop.permute.xlu1 %245 }
 0x508   :  { %v321_v19 = vpop.f32.mrb[0].mxu1 }
 0x509   :  { %v322_v20 = vadd.f32 %v321_v19, %v246_v18  ;;  %v372_v21 = vpop.f32.mrb[1].mxu1 }
 0x50b   :  { %325 = vst [vmem:[#allocation2] sm:$0xff] %v322_v20 }
 0x50c   :  { %409 = shalt.err (!%p406_p4)
}
 0x50d   :  { %s410_s11 = scalar_lea.hbm %s590_s13, 128 }
 0x50e   :  { %p411_p5 = scmp.ne.s32.totalorder %s590_s13, %s410_s11  ;;  %p414_p6 = scmp.lt.u32.totalorder %s410_s11, %s590_s13 }
 0x510   :  { %p416_p7 = pnand %p414_p6, %p411_p5 }
 0x512   :  { %419 = shalt.err (!%p416_p7)
}
 0x513   :  { %335 = dma.vmem_to_hbm [thread:$0]  %s333_s26, 128, %s590_s13, [#allocation3]  }
 0x514   :  { %420 = dma.done.wait [#allocation3], 128  }
 0x515   :  { %421 = vsyncadd [#allocation3], 4294967168 }
 0x516   :  { %339 = vsyncpa [#allocation3], 1 }

</bundles_post_ra>
